<compile_context>
chip_gen: v6e
topology: v6e:2x2x1
jax: 0.10.0
libtpu: 0.0.40
codegen_flags: <defaults>
</compile_context>

<pallas_src>
import functools

import jax
import jax.numpy as jnp
from jax import lax
from jax.experimental import pallas as pl
from jax.experimental.pallas import tpu as pltpu

LANE = 128
SUBLANE = 8


def prepare_means_soa(means):
    """One-time, camera-independent relayout of the gaussian means.

    means: [N, 3] array (the homogeneous '1' is implicit, exactly as
           RasterizationModel builds means_hom_tmp).
    Returns an SoA, sublane/lane-dense array of shape [3, R, 128] with
    R = ceil(N / 1024) * 8 (zero padded).  Cache and reuse this across
    forward calls -- it is the analogue of the module's means_hom_tmp buffer.
    """
    n = means.shape[0]
    n_pad = (-n) % (SUBLANE * LANE)          # pad to a multiple of 1024 lanes
    m = means.astype(jnp.float32)
    if n_pad:
        m = jnp.pad(m, ((0, n_pad), (0, 0)))
    r = (n + n_pad) // LANE                  # always a multiple of 8
    # means_soa[c, r, l] = means[r*128 + l, c]
    return m.T.reshape(3, r, LANE)


def _pick_tile_rows(R, ts_target=512, min_steps=4):
    """Pick the sublane-row tile: as big as possible (amortize per-step
    overhead, big contiguous DMAs) but keep >= min_steps grid steps so both
    v7x TensorCores get work via the 'parallel' axis."""
    ts = max(SUBLANE, min(ts_target, pl.cdiv(R, min_steps)))
    q = 64 if R >= 64 else SUBLANE           # keep n_chunks a multiple of 8
    ts = pl.cdiv(ts, q) * q
    return min(ts, R)


def depth_kernel(x_ref, m_ref, o_ref, *, batch, chunk, approx_div):
    # x_ref: SMEM (batch*16,)   flattened camera matrices, row-major per batch
    # m_ref: VMEM (3, ts, 128)  SoA tile of gaussian means (x/y/z planes)
    # o_ref: VMEM (batch, ts, 128) depth output tile
    ts = m_ref.shape[1]
    n_chunks = ts // chunk
    shp = (chunk, LANE)

    # Splat the 8 needed camera scalars of each batch into vregs ONCE per grid
    # step (the homogeneous '1' row of the means is folded into the x[b,row,3]
    # bias).  These stay live across the chunk loop: 8*batch vregs.
    coefs = []
    for b in range(batch):
        r2 = b * 16 + 8                      # flat offset of x[b, 2, :]
        r3 = b * 16 + 12                     # flat offset of x[b, 3, :]
        coefs.append(
            tuple(jnp.full(shp, x_ref[r2 + i], dtype=jnp.float32) for i in range(4))
            + tuple(jnp.full(shp, x_ref[r3 + i], dtype=jnp.float32) for i in range(4))
        )

    def body(c, carry):
        # Bounded live range: one 8-sublane chunk of the means, all batches,
        # store, move on (~3 + ~4*batch vregs live).
        row = pl.multiple_of(c * chunk, chunk)
        mx = m_ref[0, pl.ds(row, chunk), :]
        my = m_ref[1, pl.ds(row, chunk), :]
        mz = m_ref[2, pl.ds(row, chunk), :]
        for b in range(batch):               # static unroll (batch is small)
            a0, a1, a2, a3, b0, b1, b2, b3 = coefs[b]
            z = a0 * mx + a1 * my + a2 * mz + a3
            w = b0 * mx + b1 * my + b2 * mz + b3
            if approx_div:
                inv = pl.reciprocal(w, approx=True)   # EUP slot (free-ish)
                inv = inv * (2.0 - w * inv)           # one Newton-Raphson step
                d = z * inv
            else:
                d = z / w
            o_ref[b, pl.ds(row, chunk), :] = d.astype(o_ref.dtype)
        return carry

    unroll = True if n_chunks <= 8 else 4    # n_chunks is a multiple of 8 here
    lax.fori_loop(0, n_chunks, body, 0, unroll=unroll)


def depth_forward(x, means_soa, n, *, ts_target=512, min_steps=4, chunk=8,
                  approx_div=True, out_dtype=jnp.float32, return_padded=False):
    """Depth of each gaussian in each camera.

    x:         [B, 4, 4] camera matrices.
    means_soa: [3, R, 128] output of prepare_means_soa (cache it!).
    n:         original number of gaussians (<= R*128).
    Returns depth [B, n] (or the padded [B, R*128] if return_padded=True,
    which avoids an extra HBM pass for the trailing slice).
    """
    assert x.shape[1:] == (4, 4)
    assert chunk % SUBLANE == 0
    B = x.shape[0]
    R = means_soa.shape[1]
    ts = _pick_tile_rows(R, ts_target, min_steps)
    assert ts % chunk == 0

    # Tiny camera table: lands in SMEM once for the whole kernel (untiled
    # SMEM operand -> no per-step DMA).
    x_flat = x.astype(jnp.float32).reshape(B * 16)

    kernel = functools.partial(depth_kernel, batch=B, chunk=chunk,
                               approx_div=approx_div)
    out = pl.pallas_call(
        kernel,
        out_shape=jax.ShapeDtypeStruct((B, R, LANE), out_dtype),
        grid_spec=pltpu.PrefetchScalarGridSpec(
            num_scalar_prefetch=0,
            grid=(pl.cdiv(R, ts),),          # partial last block handled by Pallas
            in_specs=[
                pl.BlockSpec(memory_space=pltpu.MemorySpace.SMEM),
                # means tile: one pass over N total, never re-read per batch
                pl.BlockSpec((3, ts, LANE), lambda j: (0, j, 0)),
            ],
            out_specs=pl.BlockSpec((B, ts, LANE), lambda j: (0, j, 0)),
        ),
        compiler_params=pltpu.CompilerParams(
            dimension_semantics=("parallel",)),
    )(x_flat, means_soa)

    depth = out.reshape(B, R * LANE)         # contiguous collapse: free
    if return_padded or R * LANE == n:
        return depth
    return depth[:, :n]


def reference_depth(x, means):
    """Pure-JAX reference mirroring the PyTorch DepthModel.forward exactly."""
    ones = jnp.ones((means.shape[0], 1), dtype=means.dtype)
    means_hom_tmp = jnp.concatenate([means, ones], axis=1).T          # [4, N]
    means_cam_hom = jnp.einsum("bij,jn->bni", x, means_hom_tmp)       # [B, N, 4]
    means_cam = means_cam_hom[:, :, :3] / means_cam_hom[:, :, 3:4]
    return means_cam[:, :, 2]


if __name__ == "__main__":
    key = jax.random.PRNGKey(0)
    k_means, k_x = jax.random.split(key)

    B = 2          # batch of camera matrices
    N = 5000       # gaussians (exercises 1024-padding, partial last block, slice)

    means = jax.random.normal(k_means, (N, 3), dtype=jnp.float32)     # [N, 3]

    # Camera matrices: identity-ish view transform plus a small perturbation,
    # with a translation along z so w and z stay well away from zero.
    eye = jnp.eye(4, dtype=jnp.float32)[None, :, :]
    noise = 0.01 * jax.random.normal(k_x, (B, 4, 4), dtype=jnp.float32)
    x = eye + noise
    x = x.at[:, 2, 3].add(5.0)   # push gaussians in front of the camera

    # One-time relayout (camera independent) -- cache/reuse across calls.
    means_soa = jax.block_until_ready(prepare_means_soa(means))

    depth = depth_forward(x, means_soa, N)
    depth = jax.block_until_ready(depth)

    ref = reference_depth(x, means)
    assert depth.shape == (B, N)
    assert jnp.allclose(depth, ref, atol=1e-4, rtol=1e-4), "mismatch vs reference"

    print("KERNEL_OK")
</pallas_src>

<mosaic_0001>
module attributes {stable_mosaic.version = 11 : i64} {
  func.func @depth_kernel(%arg0: i32, %arg1: memref<32xf32, #tpu.memory_space<smem>>, %arg2: memref<3x16x128xf32, #tpu.memory_space<vmem>>, %arg3: memref<2x16x128xf32, #tpu.memory_space<vmem>>) attributes {dimension_semantics = [#tpu.dimension_semantics<parallel>], iteration_bounds = array<i64: 3>, scalar_prefetch = 0 : i64, scratch_operands = 0 : i64, tpu.core_type = #tpu.core_type<tc>, window_params = [{transform_indices = @transform_0, window_bounds = array<i64: 32>}, {transform_indices = @transform_1, window_bounds = array<i64: 3, 16, 128>}, {transform_indices = @transform_2, window_bounds = array<i64: 2, 16, 128>}]} {
    %c8 = arith.constant 8 : index
    %0 = memref.load %arg1[%c8] : memref<32xf32, #tpu.memory_space<smem>>
    %1 = vector.broadcast %0 : f32 to vector<8x128xf32>
    %c9 = arith.constant 9 : index
    %2 = memref.load %arg1[%c9] : memref<32xf32, #tpu.memory_space<smem>>
    %3 = vector.broadcast %2 : f32 to vector<8x128xf32>
    %c10 = arith.constant 10 : index
    %4 = memref.load %arg1[%c10] : memref<32xf32, #tpu.memory_space<smem>>
    %5 = vector.broadcast %4 : f32 to vector<8x128xf32>
    %c11 = arith.constant 11 : index
    %6 = memref.load %arg1[%c11] : memref<32xf32, #tpu.memory_space<smem>>
    %7 = vector.broadcast %6 : f32 to vector<8x128xf32>
    %c12 = arith.constant 12 : index
    %8 = memref.load %arg1[%c12] : memref<32xf32, #tpu.memory_space<smem>>
    %9 = vector.broadcast %8 : f32 to vector<8x128xf32>
    %c13 = arith.constant 13 : index
    %10 = memref.load %arg1[%c13] : memref<32xf32, #tpu.memory_space<smem>>
    %11 = vector.broadcast %10 : f32 to vector<8x128xf32>
    %c14 = arith.constant 14 : index
    %12 = memref.load %arg1[%c14] : memref<32xf32, #tpu.memory_space<smem>>
    %13 = vector.broadcast %12 : f32 to vector<8x128xf32>
    %c15 = arith.constant 15 : index
    %14 = memref.load %arg1[%c15] : memref<32xf32, #tpu.memory_space<smem>>
    %15 = vector.broadcast %14 : f32 to vector<8x128xf32>
    %c24 = arith.constant 24 : index
    %16 = memref.load %arg1[%c24] : memref<32xf32, #tpu.memory_space<smem>>
    %17 = vector.broadcast %16 : f32 to vector<8x128xf32>
    %c25 = arith.constant 25 : index
    %18 = memref.load %arg1[%c25] : memref<32xf32, #tpu.memory_space<smem>>
    %19 = vector.broadcast %18 : f32 to vector<8x128xf32>
    %c26 = arith.constant 26 : index
    %20 = memref.load %arg1[%c26] : memref<32xf32, #tpu.memory_space<smem>>
    %21 = vector.broadcast %20 : f32 to vector<8x128xf32>
    %c27 = arith.constant 27 : index
    %22 = memref.load %arg1[%c27] : memref<32xf32, #tpu.memory_space<smem>>
    %23 = vector.broadcast %22 : f32 to vector<8x128xf32>
    %c28 = arith.constant 28 : index
    %24 = memref.load %arg1[%c28] : memref<32xf32, #tpu.memory_space<smem>>
    %25 = vector.broadcast %24 : f32 to vector<8x128xf32>
    %c29 = arith.constant 29 : index
    %26 = memref.load %arg1[%c29] : memref<32xf32, #tpu.memory_space<smem>>
    %27 = vector.broadcast %26 : f32 to vector<8x128xf32>
    %c30 = arith.constant 30 : index
    %28 = memref.load %arg1[%c30] : memref<32xf32, #tpu.memory_space<smem>>
    %29 = vector.broadcast %28 : f32 to vector<8x128xf32>
    %c31 = arith.constant 31 : index
    %30 = memref.load %arg1[%c31] : memref<32xf32, #tpu.memory_space<smem>>
    %31 = vector.broadcast %30 : f32 to vector<8x128xf32>
    %c0_i32 = arith.constant 0 : i32
    %c8_i32 = arith.constant 8 : i32
    %32 = arith.muli %c0_i32, %c8_i32 : i32
    %33 = tpu.assume_multiple %32, 8 : i32
    %c0 = arith.constant 0 : index
    %34 = arith.index_cast %33 : i32 to index
    %c0_0 = arith.constant 0 : index
    %35 = vector.load %arg2[%c0, %34, %c0_0] : memref<3x16x128xf32, #tpu.memory_space<vmem>>, vector<1x8x128xf32>
    %36 = vector.shape_cast %35 : vector<1x8x128xf32> to vector<8x128xf32>
    %c1 = arith.constant 1 : index
    %37 = arith.index_cast %33 : i32 to index
    %c0_1 = arith.constant 0 : index
    %38 = vector.load %arg2[%c1, %37, %c0_1] : memref<3x16x128xf32, #tpu.memory_space<vmem>>, vector<1x8x128xf32>
    %39 = vector.shape_cast %38 : vector<1x8x128xf32> to vector<8x128xf32>
    %c2 = arith.constant 2 : index
    %40 = arith.index_cast %33 : i32 to index
    %c0_2 = arith.constant 0 : index
    %41 = vector.load %arg2[%c2, %40, %c0_2] : memref<3x16x128xf32, #tpu.memory_space<vmem>>, vector<1x8x128xf32>
    %42 = vector.shape_cast %41 : vector<1x8x128xf32> to vector<8x128xf32>
    %43 = arith.mulf %1, %36 : vector<8x128xf32>
    %44 = arith.mulf %3, %39 : vector<8x128xf32>
    %45 = arith.addf %43, %44 : vector<8x128xf32>
    %46 = arith.mulf %5, %42 : vector<8x128xf32>
    %47 = arith.addf %45, %46 : vector<8x128xf32>
    %48 = arith.addf %47, %7 : vector<8x128xf32>
    %49 = arith.mulf %9, %36 : vector<8x128xf32>
    %50 = arith.mulf %11, %39 : vector<8x128xf32>
    %51 = arith.addf %49, %50 : vector<8x128xf32>
    %52 = arith.mulf %13, %42 : vector<8x128xf32>
    %53 = arith.addf %51, %52 : vector<8x128xf32>
    %54 = arith.addf %53, %15 : vector<8x128xf32>
    %55 = tpu.reciprocal %54 {approx = true} : vector<8x128xf32> -> vector<8x128xf32>
    %56 = arith.mulf %54, %55 : vector<8x128xf32>
    %cst = arith.constant 2.000000e+00 : f32
    %57 = vector.broadcast %cst : f32 to vector<8x128xf32>
    %58 = arith.subf %57, %56 : vector<8x128xf32>
    %59 = arith.mulf %55, %58 : vector<8x128xf32>
    %60 = arith.mulf %48, %59 : vector<8x128xf32>
    %c0_3 = arith.constant 0 : index
    %61 = arith.index_cast %33 : i32 to index
    %c0_4 = arith.constant 0 : index
    %62 = vector.load %arg3[%c0_3, %61, %c0_4] : memref<2x16x128xf32, #tpu.memory_space<vmem>>, vector<1x8x128xf32>
    %63 = vector.shape_cast %62 : vector<1x8x128xf32> to vector<8x128xf32>
    %64 = vector.shape_cast %60 : vector<8x128xf32> to vector<1x8x128xf32>
    tpu.vector_store %arg3[%c0_3, %61, %c0_4], %64 {strides = array<i32>} : memref<2x16x128xf32, #tpu.memory_space<vmem>>, vector<1x8x128xf32>,
    %65 = arith.mulf %17, %36 : vector<8x128xf32>
    %66 = arith.mulf %19, %39 : vector<8x128xf32>
    %67 = arith.addf %65, %66 : vector<8x128xf32>
    %68 = arith.mulf %21, %42 : vector<8x128xf32>
    %69 = arith.addf %67, %68 : vector<8x128xf32>
    %70 = arith.addf %69, %23 : vector<8x128xf32>
    %71 = arith.mulf %25, %36 : vector<8x128xf32>
    %72 = arith.mulf %27, %39 : vector<8x128xf32>
    %73 = arith.addf %71, %72 : vector<8x128xf32>
    %74 = arith.mulf %29, %42 : vector<8x128xf32>
    %75 = arith.addf %73, %74 : vector<8x128xf32>
    %76 = arith.addf %75, %31 : vector<8x128xf32>
    %77 = tpu.reciprocal %76 {approx = true} : vector<8x128xf32> -> vector<8x128xf32>
    %78 = arith.mulf %76, %77 : vector<8x128xf32>
    %cst_5 = arith.constant 2.000000e+00 : f32
    %79 = vector.broadcast %cst_5 : f32 to vector<8x128xf32>
    %80 = arith.subf %79, %78 : vector<8x128xf32>
    %81 = arith.mulf %77, %80 : vector<8x128xf32>
    %82 = arith.mulf %70, %81 : vector<8x128xf32>
    %c1_6 = arith.constant 1 : index
    %83 = arith.index_cast %33 : i32 to index
    %c0_7 = arith.constant 0 : index
    %84 = vector.load %arg3[%c1_6, %83, %c0_7] : memref<2x16x128xf32, #tpu.memory_space<vmem>>, vector<1x8x128xf32>
    %85 = vector.shape_cast %84 : vector<1x8x128xf32> to vector<8x128xf32>
    %86 = vector.shape_cast %82 : vector<8x128xf32> to vector<1x8x128xf32>
    tpu.vector_store %arg3[%c1_6, %83, %c0_7], %86 {strides = array<i32>} : memref<2x16x128xf32, #tpu.memory_space<vmem>>, vector<1x8x128xf32>,
    %c1_i32 = arith.constant 1 : i32
    %c8_i32_8 = arith.constant 8 : i32
    %87 = arith.muli %c1_i32, %c8_i32_8 : i32
    %88 = tpu.assume_multiple %87, 8 : i32
    %c0_9 = arith.constant 0 : index
    %89 = arith.index_cast %88 : i32 to index
    %c0_10 = arith.constant 0 : index
    %90 = vector.load %arg2[%c0_9, %89, %c0_10] : memref<3x16x128xf32, #tpu.memory_space<vmem>>, vector<1x8x128xf32>
    %91 = vector.shape_cast %90 : vector<1x8x128xf32> to vector<8x128xf32>
    %c1_11 = arith.constant 1 : index
    %92 = arith.index_cast %88 : i32 to index
    %c0_12 = arith.constant 0 : index
    %93 = vector.load %arg2[%c1_11, %92, %c0_12] : memref<3x16x128xf32, #tpu.memory_space<vmem>>, vector<1x8x128xf32>
    %94 = vector.shape_cast %93 : vector<1x8x128xf32> to vector<8x128xf32>
    %c2_13 = arith.constant 2 : index
    %95 = arith.index_cast %88 : i32 to index
    %c0_14 = arith.constant 0 : index
    %96 = vector.load %arg2[%c2_13, %95, %c0_14] : memref<3x16x128xf32, #tpu.memory_space<vmem>>, vector<1x8x128xf32>
    %97 = vector.shape_cast %96 : vector<1x8x128xf32> to vector<8x128xf32>
    %98 = arith.mulf %1, %91 : vector<8x128xf32>
    %99 = arith.mulf %3, %94 : vector<8x128xf32>
    %100 = arith.addf %98, %99 : vector<8x128xf32>
    %101 = arith.mulf %5, %97 : vector<8x128xf32>
    %102 = arith.addf %100, %101 : vector<8x128xf32>
    %103 = arith.addf %102, %7 : vector<8x128xf32>
    %104 = arith.mulf %9, %91 : vector<8x128xf32>
    %105 = arith.mulf %11, %94 : vector<8x128xf32>
    %106 = arith.addf %104, %105 : vector<8x128xf32>
    %107 = arith.mulf %13, %97 : vector<8x128xf32>
    %108 = arith.addf %106, %107 : vector<8x128xf32>
    %109 = arith.addf %108, %15 : vector<8x128xf32>
    %110 = tpu.reciprocal %109 {approx = true} : vector<8x128xf32> -> vector<8x128xf32>
    %111 = arith.mulf %109, %110 : vector<8x128xf32>
    %cst_15 = arith.constant 2.000000e+00 : f32
    %112 = vector.broadcast %cst_15 : f32 to vector<8x128xf32>
    %113 = arith.subf %112, %111 : vector<8x128xf32>
    %114 = arith.mulf %110, %113 : vector<8x128xf32>
    %115 = arith.mulf %103, %114 : vector<8x128xf32>
    %c0_16 = arith.constant 0 : index
    %116 = arith.index_cast %88 : i32 to index
    %c0_17 = arith.constant 0 : index
    %117 = vector.load %arg3[%c0_16, %116, %c0_17] : memref<2x16x128xf32, #tpu.memory_space<vmem>>, vector<1x8x128xf32>
    %118 = vector.shape_cast %117 : vector<1x8x128xf32> to vector<8x128xf32>
    %119 = vector.shape_cast %115 : vector<8x128xf32> to vector<1x8x128xf32>
    tpu.vector_store %arg3[%c0_16, %116, %c0_17], %119 {strides = array<i32>} : memref<2x16x128xf32, #tpu.memory_space<vmem>>, vector<1x8x128xf32>,
    %120 = arith.mulf %17, %91 : vector<8x128xf32>
    %121 = arith.mulf %19, %94 : vector<8x128xf32>
    %122 = arith.addf %120, %121 : vector<8x128xf32>
    %123 = arith.mulf %21, %97 : vector<8x128xf32>
    %124 = arith.addf %122, %123 : vector<8x128xf32>
    %125 = arith.addf %124, %23 : vector<8x128xf32>
    %126 = arith.mulf %25, %91 : vector<8x128xf32>
    %127 = arith.mulf %27, %94 : vector<8x128xf32>
    %128 = arith.addf %126, %127 : vector<8x128xf32>
    %129 = arith.mulf %29, %97 : vector<8x128xf32>
    %130 = arith.addf %128, %129 : vector<8x128xf32>
    %131 = arith.addf %130, %31 : vector<8x128xf32>
    %132 = tpu.reciprocal %131 {approx = true} : vector<8x128xf32> -> vector<8x128xf32>
    %133 = arith.mulf %131, %132 : vector<8x128xf32>
    %cst_18 = arith.constant 2.000000e+00 : f32
    %134 = vector.broadcast %cst_18 : f32 to vector<8x128xf32>
    %135 = arith.subf %134, %133 : vector<8x128xf32>
    %136 = arith.mulf %132, %135 : vector<8x128xf32>
    %137 = arith.mulf %125, %136 : vector<8x128xf32>
    %c1_19 = arith.constant 1 : index
    %138 = arith.index_cast %88 : i32 to index
    %c0_20 = arith.constant 0 : index
    %139 = vector.load %arg3[%c1_19, %138, %c0_20] : memref<2x16x128xf32, #tpu.memory_space<vmem>>, vector<1x8x128xf32>
    %140 = vector.shape_cast %139 : vector<1x8x128xf32> to vector<8x128xf32>
    %141 = vector.shape_cast %137 : vector<8x128xf32> to vector<1x8x128xf32>
    tpu.vector_store %arg3[%c1_19, %138, %c0_20], %141 {strides = array<i32>} : memref<2x16x128xf32, #tpu.memory_space<vmem>>, vector<1x8x128xf32>,
    %c2_i32 = arith.constant 2 : i32
    return
  }
  func.func @transform_0(%arg0: i32) -> i32 {
    %c0_i32 = arith.constant 0 : i32
    %c0_i32_0 = arith.constant 0 : i32
    return %c0_i32 : i32
  }
  func.func @transform_1(%arg0: i32) -> (i32, i32, i32) {
    %c0_i32 = arith.constant 0 : i32
    %c0_i32_0 = arith.constant 0 : i32
    %c0_i32_1 = arith.constant 0 : i32
    return %c0_i32, %arg0, %c0_i32_0 : i32, i32, i32
  }
  func.func @transform_2(%arg0: i32) -> (i32, i32, i32) {
    %c0_i32 = arith.constant 0 : i32
    %c0_i32_0 = arith.constant 0 : i32
    %c0_i32_1 = arith.constant 0 : i32
    return %c0_i32, %arg0, %c0_i32_0 : i32, i32, i32
  }
}

</mosaic_0001>

<bundles_post_ra>
// kernel: tpu_custom_call.1
= control target key start
LH: loop header
LB: loop body
LE: loop exit
PB: predicated region body
PF: predicated region fallthrough
CT: control target
= control target key end

     0   :  { %7 = vsyncpa [#allocation5], 0  ;;  %s879_s0 = inlined_call_operand.hbm [shape: f32[32], index: 0, kind: input, shape index: {}]   ;;  %s880_s1 = inlined_call_operand.hbm [shape: f32[3,40,128], index: 1, kind: input, shape index: {}]   ;;  %s881_s2 = inlined_call_operand.hbm [shape: f32[2,40,128], index: 2, kind: output, shape index: {}]  }
   0x1   :  { %8 = vsyncpa [#allocation3], 0 }
   0x2   :  { %10 = vsyncpa [#allocation3 + $0x1], 0 }
   0x3   :  { %11 = vsyncpa [#allocation4], 0 }
   0x4   :  { %13 = vsyncpa [#allocation4 + $0x1], 0  ;;  %s679_s9 = smov 0   ;;  %s681_s10 = smov 0  }
   0x5   :  { %s683_s11 = smov 0   ;;  %s685_s12 = smov 0  }
   0x6 LB: > { %s700_s13 = sadd.s32 4294967295, %s650_s12   ;;  %s473_s14 = sadd.s32 4294967294, %s650_s12   ;;  %s650_s12 = sphi %s685_s12, %s890_s12   ;;  %s646_s11 = sphi %s683_s11, %s889_s11   ;;  %s642_s10 = sphi %s681_s10, %s888_s10   ;;  %s638_s9 = sphi %s679_s9, %s887_s9  }
   0x7   : > { %s704_s15 = sadd.s32 1, %s650_s12   ;;  %s47_s16 = sadd.s32 1, %s646_s11 }
   0x8   : > { %s44_s17 = ssub.s32 %s650_s12, %s704_s15  ;;  %p54_p0 = scmp.ne.s32.totalorder %s646_s11, %s642_s10 }
   0x9   : > { %p45_p1 = scmp.eq.s32.totalorder %s44_s17, 0  ;;  %p55_p2 = scmp.eq.s32.totalorder %s650_s12, 0 }
   0xa   : > { %p60_p3 = scmp.ne.s32.totalorder %s642_s10, %s638_s9  ;;  %p61_p4 = scmp.eq.s32.totalorder %s700_s13, 0 }
   0xb   : > { %s716_s18 = scalar_select %p45_p1, %s646_s11, %s47_s16  }
   0xc   : > { %p718_p5 = por %p55_p2, %p54_p0  ;;  %p724_p6 = por %p61_p4, %p60_p3 }
   0xd   : > { %p84_p7 = scmp.eq.s32.totalorder %s700_s13, 2  ;;  %p90_p8 = scmp.eq.s32.totalorder %s473_s14, 2 }
   0xe   : > { %p474_p9 = scmp.ge.s32.totalorder %s650_s12, 1  ;;  %p97_p10 = scmp.lt.s32.totalorder %s650_s12, 4 }
   0xf   : > { %p731_p11 = por %p84_p7, %p54_p0  ;;  %p735_p12 = por %p90_p8, %p60_p3 }
  0x10   : > { %p739_p13 = pnand %p474_p9, %p97_p10  ;;  %s652_s24 = smov [#allocation2]  }
  0x11   : > { %p476_p0 = scmp.ge.s32.totalorder %s650_s12, 3 }
  0x12   : > { %p534_p1 = pneg %p739_p13 }
  0x13   : > { %115 = sbr.rel (%p476_p0) target bundleno = 47 (0x2f), region = 20 }
  0x14   : > { %p535_p2 = pnand %p534_p1, %p61_p4 }
  0x16   : > { %537 = dma.hbm_to_smem (!%p535_p2), %s879_s0, 16, %s652_s24, [#allocation5]  }
  0x18   : > { %118 = sbr.rel (!%p718_p5) target bundleno = 47 (0x2f), region = 24 }
  0x1d   : > { %s119_s27 = sand.u32 1, %s646_s11   ;;  %s477_s28 = sshll.u32 %s650_s12, 1 }
  0x1e   : > { %s526_s29 = smul.u32 48, %s119_s27  ;;  %s125_s30 = ssub.s32 5, %s477_s28 }
  0x1f   : > { %p126_p3 = scmp.lt.s32.totalorder %s125_s30, 2  ;;  %s120_s5 = scalar_lea.sflag [#allocation3], %s119_s27 }
  0x20   : > { %s123_s6 = scalar_lea.vmem [#allocation6], %s526_s29 }
  0x21   : > { %s892_s30 = smov (!%p126_p3, %s125_s30), 2 }
  0x22   : > { %s128_s3 = smul.u32 384, %s892_s30 }
  0x24   : > { %s130_s4 = ssub.s32 768, %s128_s3 }
  0x25   : > { %131 = vsyncadd %s120_s5, %s130_s4  ;;  %p478_p7 = scmp.ne.s32.totalorder %s128_s3, 0  ;;  %s522_s7 = sshll.u32 %s650_s12, 8 }
  0x26   : > { %s134_s16 = scalar_lea.hbm %s880_s1, %s522_s7  ;;  %s141_s17 = sld [smem:[#allocation0]]  }
  0x27   : > { %s149_s19 = sshll.u32 %s123_s6, 4  ;;  %s653_s24 = smov 640   ;;  %s150_s19 = int_to_ptr.vmem [resolvable:$true] %s149_s19 }
  0x28   : > { %156 = sst [smem:[#allocation9]] %s653_s24  ;;  %s654_s25 = smov 256  }
  0x29   : > { %160 = sst [smem:[#allocation9 + $0x2]] %s892_s30  ;;  %s655_s26 = smov 128  }
  0x2a   : > { %158 = sst [smem:[#allocation9 + $0x1]] %s654_s25  ;;  %s656_s29 = smov 8  }
  0x2b   : > { %162 = sst [smem:[#allocation9 + $0x3]] %s655_s26  ;;  %s657_s4 = smov 131072  }
  0x2c   : > { %s482_s27 = sshll.u32 %s141_s17, 26  ;;  %164 = sst [smem:[#allocation9 + $0x4]] %s655_s26 }
  0x2d   : > { %s483_s28 = sadd.s32 134217728, %s482_s27  ;;  %166 = sst [smem:[#allocation9 + $0x5]] %s656_s29 }
  0x2e   : > { %168 = dma.general (%p478_p7), %s134_s16, %s128_s3, %s150_s19, %s120_s5, %s657_s4, [#allocation9], %s483_s28, 0  }
  0x2f PF: > { %174 = sbr.rel (%p739_p13) target bundleno = 123 (0x7b), region = 28 }
  0x34   : > { %625 = dma.done.wait (%p61_p4), [#allocation5], 16  }
  0x35   : > { %627 = vsyncadd (%p61_p4), [#allocation5], 4294967280  ;;  %s767_s30 = sand.u32 1, %s642_s10  }
  0x36   : > { %s527_s6 = smul.u32 48, %s767_s30  ;;  %s181_s7 = scalar_lea.sflag [#allocation3], %s767_s30 }
  0x38   : > { %s184_s3 = scalar_lea.vmem [#allocation6], %s527_s6 }
  0x39   : > { %629 = dma.done.wait (%p724_p6), %s181_s7, 768  }
  0x3a   : > { %631 = vsyncadd (%p724_p6), %s181_s7, 4294966528 }
  0x3b   : > { %189 = sfence }
  0x3c   : > { %s492_s23 = sld [smem:[#allocation2 + $0xc]]  ;;  %v777_v0 = vld [vmem:[%s184_s3] sm:$0xff]  ;;  %v779_v1 = vld [vmem:[%s184_s3 + $0x8] sm:$0xff]  ;;  %v781_v2 = vld [vmem:[%s184_s3 + $0x10] sm:$0xff]  ;;  %s487_s7 = sshll.u32 %s767_s30, 5 }
  0x3d   : > { %s493_s5 = sld [smem:[#allocation2 + $0xd]]  ;;  %v785_v4 = vld [vmem:[%s184_s3 + $0x20] sm:$0xff]  ;;  %v787_v5 = vld [vmem:[%s184_s3 + $0x18] sm:$0xff]  ;;  %v789_v6 = vld [vmem:[%s184_s3 + $0x28] sm:$0xff]  ;;  %s842_s3 = scalar_lea.vmem [#allocation7], %s487_s7 }
  0x3e   : > { %s494_s8 = sld [smem:[#allocation2 + $0xe]] }
  0x3f   : > { %s775_s14 = sld [smem:[#allocation2 + $0xf]] }
  0x40   : > { %s783_s16 = sld [smem:[#allocation2 + $0x8]] }
  0x41   : > { %s791_s20 = sld [smem:[#allocation2 + $0x9]] }
  0x42   : > { %v225_v3 = vstv %s492_s23  ;;  %s500_s17 = sld [smem:[#allocation2 + $0x1c]]  ;;  %s339_s23 = scalar_lea.sflag [#allocation4], %s767_s30 }
  0x43   : > { %v227_v7 = vstv %s493_s5  ;;  %v261_v8 = vmul.f32 %v777_v0, %v225_v3  ;;  %v306_v9 = vmul.f32 %v779_v1, %v225_v3  ;;  %s501_s19 = sld [smem:[#allocation2 + $0x1d]] }
  0x44   : > { %v229_v10 = vstv %s494_s8  ;;  %v262_v11 = vmul.f32 %v781_v2, %v227_v7  ;;  %v307_v13 = vmul.f32 %v787_v5, %v227_v7  ;;  %s502_s24 = sld [smem:[#allocation2 + $0x1e]] }
  0x45   : > { %v264_v12 = vmul.f32 %v785_v4, %v229_v10  ;;  %v309_v14 = vmul.f32 %v789_v6, %v229_v10  ;;  %v231_v16 = vstv %s775_s14  ;;  %s800_s25 = sld [smem:[#allocation2 + $0x1f]] }
  0x46   : > { %v263_v15 = vadd.f32 %v262_v11, %v261_v8  ;;  %v308_v17 = vadd.f32 %v307_v13, %v306_v9  ;;  %s802_s26 = sld [smem:[#allocation2 + $0xa]]  ;;  %v217_v28 = vstv %s783_s16 }
  0x47   : > { %s805_s27 = sld [smem:[#allocation2 + $0x18]]  ;;  %v219_v29 = vstv %s791_s20  ;;  %v255_v35 = vmul.f32 %v777_v0, %v217_v28  ;;  %v300_v40 = vmul.f32 %v779_v1, %v217_v28 }
  0x48   : > { %v265_v18 = vadd.f32 %v264_v12, %v263_v15  ;;  %v310_v19 = vadd.f32 %v309_v14, %v308_v17  ;;  %v241_v21 = vstv %s500_s17  ;;  %s811_s28 = sld [smem:[#allocation2 + $0x19]]  ;;  %v256_v36 = vmul.f32 %v781_v2, %v219_v29 }
  0x49   : > { %v243_v22 = vstv %s501_s19  ;;  %v279_v23 = vmul.f32 %v777_v0, %v241_v21  ;;  %v325_v27 = vmul.f32 %v779_v1, %v241_v21  ;;  %s817_s29 = sld [smem:[#allocation2 + $0xb]]  ;;  %v301_v41 = vmul.f32 %v787_v5, %v219_v29 }
  0x4a   : > { %v266_v20 = vadd.f32 %v265_v18, %v231_v16  ;;  %v311_v24 = vadd.f32 %v310_v19, %v231_v16  ;;  %v245_v25 = vstv %s502_s24  ;;  %v280_v26 = vmul.f32 %v781_v2, %v243_v22  ;;  %s822_s4 = sld [smem:[#allocation2 + $0x1a]] }
  0x4b   : > { %v282_v30 = vmul.f32 %v785_v4, %v245_v25  ;;  %v326_v32 = vmul.f32 %v787_v5, %v243_v22  ;;  %v328_v33 = vmul.f32 %v789_v6, %v245_v25  ;;  %v247_v34 = vstv %s800_s25  ;;  %s834_s6 = sld [smem:[#allocation2 + $0x1b]] }
  0x4c   : > { %589 = vrcp.f32 %v266_v20  ;;  %v281_v31 = vadd.f32 %v280_v26, %v279_v23  ;;  %v221_v39 = vstv %s802_s26  ;;  %v257_v44 = vadd.f32 %v256_v36, %v255_v35 }
  0x4d   : > { %591 = vrcp.f32 %v311_v24  ;;  %v327_v38 = vadd.f32 %v326_v32, %v325_v27  ;;  %v258_v45 = vmul.f32 %v785_v4, %v221_v39  ;;  %v233_v47 = vstv %s805_s27 }
  0x4e   : > { %v283_v37 = vadd.f32 %v282_v30, %v281_v31  ;;  %v235_v48 = vstv %s811_s28  ;;  %v302_v49 = vadd.f32 %v301_v41, %v300_v40  ;;  %v303_v50 = vmul.f32 %v789_v6, %v221_v39 }
  0x4f   : > { %v329_v43 = vadd.f32 %v328_v33, %v327_v38  ;;  %v259_v51 = vadd.f32 %v258_v45, %v257_v44  ;;  %v273_v52 = vmul.f32 %v777_v0, %v233_v47  ;;  %v274_v53 = vmul.f32 %v781_v2, %v235_v48 }
  0x50   : > { %v284_v42 = vadd.f32 %v283_v37, %v247_v34  ;;  %v223_v55 = vstv %s817_s29  ;;  %v237_v56 = vstv %s822_s4  ;;  %v304_v57 = vadd.f32 %v303_v50, %v302_v49 }
  0x51   : > { %v330_v46 = vadd.f32 %v329_v43, %v247_v34  ;;  %v319_v60 = vmul.f32 %v779_v1, %v233_v47  ;;  %v320_v61 = vmul.f32 %v787_v5, %v235_v48  ;;  %v260_v63 = vadd.f32 %v259_v51, %v223_v55 }
  0x52   : > { %593 = vrcp.f32 %v284_v42  ;;  %v275_v0 = vadd.f32 %v274_v53, %v273_v52  ;;  %v276_v2 = vmul.f32 %v785_v4, %v237_v56  ;;  %v305_v7 = vadd.f32 %v304_v57, %v223_v55 }
  0x53   : > { %595 = vrcp.f32 %v330_v46  ;;  %v321_v10 = vadd.f32 %v320_v61, %v319_v60  ;;  %v322_v11 = vmul.f32 %v789_v6, %v237_v56  ;;  %v239_v15 = vstv %s834_s6 }
  0x54   : > { %v277_v14 = vadd.f32 %v276_v2, %v275_v0 }
  0x55   : > { %v323_v16 = vadd.f32 %v322_v11, %v321_v10 }
  0x56   : > { %v278_v18 = vadd.f32 %v277_v14, %v239_v15 }
  0x57   : > { %v324_v21 = vadd.f32 %v323_v16, %v239_v15 }
  0x59   : > { %v590_v54 = vpop.eup %589 }
  0x5a   : > { %v592_v58 = vpop.eup %591  ;;  %v268_v59 = vmul.f32 %v590_v54, %v266_v20 }
  0x5b   : > { %v313_v62 = vmul.f32 %v592_v58, %v311_v24 }
  0x5c   : > { %v269_v3 = vsub.f32 2.0, %v268_v59 }
  0x5d   : > { %v314_v8 = vsub.f32 2.0, %v313_v62 }
  0x5e   : > { %v270_v9 = vmul.f32 %v590_v54, %v269_v3 }
  0x5f   : > { %v315_v12 = vmul.f32 %v592_v58, %v314_v8  ;;  %v594_v1 = vpop.eup %593 }
  0x60   : > { %v271_v13 = vmul.f32 %v270_v9, %v260_v63  ;;  %v286_v4 = vmul.f32 %v594_v1, %v284_v42  ;;  %v596_v17 = vpop.eup %595 }
  0x61   : > { %v316_v5 = vmul.f32 %v315_v12, %v305_v7  ;;  %v332_v19 = vmul.f32 %v596_v17, %v330_v46 }
  0x62   : > { %272 = vst [vmem:[%s842_s3] sm:$0xff] %v271_v13  ;;  %v287_v6 = vsub.f32 2.0, %v286_v4 }
  0x63   : > { %510 = vst [vmem:[%s842_s3 + $0x8] sm:$0xff] %v316_v5  ;;  %v333_v22 = vsub.f32 2.0, %v332_v19 }
  0x64   : > { %v288_v20 = vmul.f32 %v594_v1, %v287_v6 }
  0x65   : > { %v334_v24 = vmul.f32 %v596_v17, %v333_v22  ;;  %345 = sbr.rel (!%p731_p11) target bundleno = 123 (0x7b), region = 40 }
  0x66   : > { %v289_v23 = vmul.f32 %v288_v20, %v278_v18 }
  0x67   : > { %v335_v25 = vmul.f32 %v334_v24, %v324_v21 }
  0x68   : > { %506 = vst [vmem:[%s842_s3 + $0x10] sm:$0xff] %v289_v23 }
  0x69   : > { %511 = vst [vmem:[%s842_s3 + $0x18] sm:$0xff] %v335_v25 }
  0x6a   : > { %s513_s5 = sshll.u32 %s700_s13, 1 }
  0x6b   : > { %s347_s8 = ssub.s32 5, %s513_s5 }
  0x6c   : > { %p348_p4 = scmp.lt.s32.totalorder %s347_s8, 2 }
  0x6e   : > { %s894_s8 = smov (!%p348_p4, %s347_s8), 2 }
  0x6f   : > { %s514_s14 = sshll.u32 %s894_s8, 8 }
  0x70   : > { %s352_s16 = ssub.s32 512, %s514_s14 }
  0x71   : > { %353 = vsyncadd %s339_s23, %s352_s16  ;;  %p515_p5 = scmp.ne.s32.totalorder %s514_s14, 0  ;;  %s523_s20 = sshll.u32 %s700_s13, 8 }
  0x72   : > { %s356_s21 = scalar_lea.hbm %s881_s2, %s523_s20  ;;  %s369_s24 = sshll.u32 %s842_s3, 4  ;;  %s370_s24 = int_to_ptr.vmem [resolvable:$true] %s369_s24 }
  0x73   : > { %s658_s25 = smov 256   ;;  %s659_s26 = smov 640  }
  0x74   : > { %376 = sst [smem:[#allocation11]] %s658_s25  ;;  %s660_s27 = smov 128  }
  0x75   : > { %378 = sst [smem:[#allocation11 + $0x1]] %s659_s26  ;;  %s661_s28 = smov 8  }
  0x76   : > { %380 = sst [smem:[#allocation11 + $0x2]] %s894_s8  ;;  %s662_s29 = smov 131072  }
  0x77   : > { %382 = sst [smem:[#allocation11 + $0x3]] %s660_s27  ;;  %s663_s4 = smov 0  }
  0x78   : > { %384 = sst [smem:[#allocation11 + $0x4]] %s660_s27 }
  0x79   : > { %386 = sst [smem:[#allocation11 + $0x5]] %s661_s28 }
  0x7a   : > { %388 = dma.general (%p515_p5), %s370_s24, %s514_s14, %s356_s21, %s339_s23, %s662_s29, [#allocation11], %s663_s4, 0  }
  0x7b PF: > { %p544_p6 = scmp.ge.s32.totalorder %s650_s12, 2  ;;  %s397_s13 = sand.u32 1, %s638_s9  }
  0x7c   : > { %s398_s6 = scalar_lea.sflag [#allocation4], %s397_s13 }
  0x7d   : > { %p539_p8 = pnand %p544_p6, %p735_p12 }
  0x7f   : > { %p540_p9 = pneg %p539_p8 }
  0x81   : > { %633 = dma.done.wait (%p540_p9), %s398_s6, 512  }
  0x82   : > { %635 = vsyncadd (%p540_p9), %s398_s6, 4294966784  ;;  %p16_p10 = scmp.ge.s32.totalorder %s704_s15, 5   ;;  %s887_s9 = smov %s642_s10 }
  0x83   : > { %s888_s10 = smov %s646_s11  ;;  %s889_s11 = smov %s716_s18 }
  0x84   : > { %s890_s12 = smov %s704_s15  ;;  %18 = sbr.rel (!%p16_p10) target bundleno = 6 (0x6), region = 96 }
  0x89   :  { %403 = vsyncpa [#allocation3], 1 }
  0x8a   :  { %405 = vsyncpa [#allocation3 + $0x1], 1 }
  0x8b   :  { %406 = vsyncpa [#allocation4], 1 }
  0x8c   :  { %408 = vsyncpa [#allocation4 + $0x1], 1 }
  0x8d   :  { %409 = vsyncpa [#allocation5], 1 }
  0x8e   :  { %411 = vsyncpa [#allocation5 + $0x1], 1 }

</bundles_post_ra>
